<compile_context>
chip_gen: v7x
topology: tpu7x:2x2x1
jax: 0.10.0
libtpu: 0.0.40
codegen_flags: <defaults>
</compile_context>

<pallas_src>
import functools

import jax
import jax.numpy as jnp
from jax.experimental import pallas as pl
from jax.experimental.pallas import tpu as pltpu

EPS = 1e-5      # nn.LayerNorm default
LANE = 128
SUBLANE = 8


def _round_up(x, m):
    return ((x + m - 1) // m) * m


def _default_batch_tile(B, in_feat):
    """Batch tile selection.

    - tiny batches: single step (nothing to shard / amortize);
    - otherwise target <= ~2048 rows per step (per-step payload is a few MB at
      most -> far under the default scoped VMEM on v5e/v6e/v7x) while keeping
      an even number of >=2 grid steps so the 'parallel' batch axis uses both
      TensorCores on v7x without a straggler step.
    """
    Bp = _round_up(max(B, 1), SUBLANE)
    if Bp < 256:
        return Bp
    steps = max(2, -(-Bp // 2048))
    steps += steps % 2                      # even step count
    tile = _round_up(-(-Bp // steps), SUBLANE)
    # keep the double-buffered input block comfortably inside scoped VMEM even
    # for very wide inputs (irrelevant at in_feat=32, cheap insurance).
    max_tile = max(256, _round_up((4 << 20) // max(4 * in_feat, 1), SUBLANE))
    return min(tile, max_tile)


def actor_kernel(x_ref, wp_ref, vp_ref, out_ref, *, dims, w_offs):
    """Fused fc1..fc4 (+LayerNorm+ReLU) and mu (+tanh) for one batch tile."""
    in_feat, fc1, fc2, fc3, fc4, n_act = dims
    f32 = jnp.float32
    mm_dtype = wp_ref.dtype          # bf16 or f32 weights; accumulation is f32

    def layernorm(z, g, be):
        # single-pass statistics: the two cross-lane reductions are independent
        # (overlap on the XLU) and one full-tile temporary is saved.
        mean = jnp.mean(z, axis=-1, keepdims=True)
        var = jnp.mean(z * z, axis=-1, keepdims=True) - mean * mean
        return (z - mean) * jax.lax.rsqrt(var + EPS) * g + be

    def dense_ln_relu(h, layer, in_dim, out_dim):
        # static, 8-row-aligned slices out of the consolidated parameter block
        w = wp_ref[w_offs[layer]:w_offs[layer] + in_dim, 0:out_dim]
        b = vp_ref[4 * layer + 0:4 * layer + 1, 0:out_dim]
        g = vp_ref[4 * layer + 1:4 * layer + 2, 0:out_dim]
        be = vp_ref[4 * layer + 2:4 * layer + 3, 0:out_dim]
        z = jnp.dot(h.astype(mm_dtype), w, preferred_element_type=f32) + b
        return jnp.maximum(layernorm(z, g, be), 0.0)

    h = x_ref[...].astype(f32)
    h = dense_ln_relu(h, 0, in_feat, fc1)    # fc1 -> LN -> ReLU
    h = dense_ln_relu(h, 1, fc1, fc2)        # fc2 -> LN -> ReLU
    h = dense_ln_relu(h, 2, fc2, fc3)        # fc3 -> LN -> ReLU
    h = dense_ln_relu(h, 3, fc3, fc4)        # fc4 -> LN -> ReLU

    # mu -> tanh, written at true n_actions width (no lane padding of the HBM
    # output -> no write amplification).
    wm = wp_ref[w_offs[4]:w_offs[4] + fc4, 0:n_act]
    bm = vp_ref[16:17, 0:n_act]
    mu = jnp.dot(h.astype(mm_dtype), wm, preferred_element_type=f32) + bm
    out_ref[...] = jnp.tanh(mu).astype(out_ref.dtype)


def pack_params(params, use_bf16):
    """Consolidate all parameters into two arrays (one DMA stream each)."""
    w_list = [params["w1"], params["w2"], params["w3"], params["w4"], params["wm"]]
    lane_pad = _round_up(max(w.shape[1] for w in w_list), LANE)
    w_dtype = jnp.bfloat16 if use_bf16 else jnp.float32

    blocks, w_offs, row = [], [], 0
    for w in w_list:
        w_offs.append(row)
        in_p = _round_up(w.shape[0], SUBLANE)       # 8-row aligned section
        blk = jnp.zeros((in_p, lane_pad), jnp.float32)
        blk = blk.at[:w.shape[0], :w.shape[1]].set(w)
        blocks.append(blk)
        row += in_p
    wp = jnp.concatenate(blocks, axis=0).astype(w_dtype)   # cast ONCE here

    # bias/gamma/beta for the 4 hidden layers (rows 4l..4l+2) + mu bias (row 16)
    vp = jnp.zeros((_round_up(4 * 4 + 1, SUBLANE), lane_pad), jnp.float32)
    vec_names = (("b1", "g1", "be1"), ("b2", "g2", "be2"),
                 ("b3", "g3", "be3"), ("b4", "g4", "be4"))
    for l, names in enumerate(vec_names):
        for r, nm in enumerate(names):
            v = params[nm]
            vp = vp.at[4 * l + r, :v.shape[1]].set(v[0])
    vp = vp.at[16, :params["bm"].shape[1]].set(params["bm"][0])

    dims = (params["w1"].shape[0], params["w1"].shape[1], params["w2"].shape[1],
            params["w3"].shape[1], params["w4"].shape[1], params["wm"].shape[1])
    return wp, vp, tuple(w_offs), dims


def actor_forward(state, params, *, batch_tile=None, use_bf16=True):
    """state: [B, input_dims*n_agents] float32 -> [B, n_actions] float32."""
    B, in_feat = state.shape
    wp, vp, w_offs, dims = pack_params(params, use_bf16)
    n_actions = dims[-1]

    if batch_tile is None:
        batch_tile = _default_batch_tile(B, in_feat)
    batch_tile = max(SUBLANE, _round_up(batch_tile, SUBLANE))

    # Pad the batch so every grid step is a full tile (padded rows are computed
    # on zeros and sliced off afterwards -- no truncation for non-divisible B).
    Bp = _round_up(B, batch_tile)
    if Bp != B:
        state = jnp.pad(state, ((0, Bp - B), (0, 0)))
    grid = (Bp // batch_tile,)

    kernel = functools.partial(actor_kernel, dims=dims, w_offs=w_offs)

    in_specs = [
        pl.BlockSpec((batch_tile, in_feat), lambda i: (i, 0)),   # batch tiled
        pl.BlockSpec(wp.shape, lambda i: (0, 0)),   # constant block index ->
        pl.BlockSpec(vp.shape, lambda i: (0, 0)),   # params fetched only once
    ]
    out_spec = pl.BlockSpec((batch_tile, n_actions), lambda i: (i, 0))

    out = pl.pallas_call(
        kernel,
        out_shape=jax.ShapeDtypeStruct((Bp, n_actions), jnp.float32),
        grid_spec=pltpu.PrefetchScalarGridSpec(
            num_scalar_prefetch=0,
            grid=grid,
            in_specs=in_specs,
            out_specs=out_spec,
        ),
        compiler_params=pltpu.CompilerParams(
            # batch axis is embarrassingly parallel -> shards the >=2 grid
            # steps across the two TensorCores on v7x.
            dimension_semantics=("parallel",)),
    )(state, wp, vp)

    return out[:B]


def init_params(key, input_dims, fc1, fc2, fc3, fc4, n_actions):
    """Deterministic init mirroring ActorNetwork.__init__ (uniform ranges)."""
    ks = jax.random.split(key, 10)

    def lin(kw, kb, fan_in, fan_out, bound):
        # PyTorch weight is [out, in]; store transposed [in, out] for x @ W.
        w = jax.random.uniform(kw, (fan_in, fan_out), jnp.float32, -bound, bound)
        b = jax.random.uniform(kb, (1, fan_out), jnp.float32, -bound, bound)
        return w, b

    # Reference uses 1/sqrt(weight.size()[0]) == 1/sqrt(out_features).
    f1 = 1.0 / jnp.sqrt(fc1)
    f2 = 1.0 / jnp.sqrt(fc2)
    f3 = 1.0 / jnp.sqrt(fc3)
    f4 = 1.0 / jnp.sqrt(fc4)
    f5 = 0.003

    w1, b1 = lin(ks[0], ks[1], input_dims, fc1, f1)
    w2, b2 = lin(ks[2], ks[3], fc1, fc2, f2)
    w3, b3 = lin(ks[4], ks[5], fc2, fc3, f3)
    w4, b4 = lin(ks[6], ks[7], fc3, fc4, f4)
    wm, bm = lin(ks[8], ks[9], fc4, n_actions, f5)

    def ln(dim):
        return jnp.ones((1, dim), jnp.float32), jnp.zeros((1, dim), jnp.float32)

    g1, be1 = ln(fc1)
    g2, be2 = ln(fc2)
    g3, be3 = ln(fc3)
    g4, be4 = ln(fc4)

    return dict(w1=w1, b1=b1, g1=g1, be1=be1,
                w2=w2, b2=b2, g2=g2, be2=be2,
                w3=w3, b3=b3, g3=g3, be3=be3,
                w4=w4, b4=b4, g4=g4, be4=be4,
                wm=wm, bm=bm)


def reference_forward(state, p):
    hp = jax.lax.Precision.HIGHEST   # true-f32 reference matmuls

    def layernorm(h, g, b):
        mean = jnp.mean(h, axis=-1, keepdims=True)
        var = jnp.mean((h - mean) ** 2, axis=-1, keepdims=True)
        return (h - mean) * jax.lax.rsqrt(var + EPS) * g + b

    def lin(h, w, b):
        return jnp.dot(h, w, precision=hp) + b

    h = jnp.maximum(layernorm(lin(state, p["w1"], p["b1"]), p["g1"], p["be1"]), 0.0)
    h = jnp.maximum(layernorm(lin(h, p["w2"], p["b2"]), p["g2"], p["be2"]), 0.0)
    h = jnp.maximum(layernorm(lin(h, p["w3"], p["b3"]), p["g3"], p["be3"]), 0.0)
    h = jnp.maximum(layernorm(lin(h, p["w4"], p["b4"]), p["g4"], p["be4"]), 0.0)
    return jnp.tanh(lin(h, p["wm"], p["bm"]))


if __name__ == "__main__":
    # Small shapes consistent with the module: input_dims=16, n_agents=2 -> 32.
    input_dims, n_agents = 16, 2
    in_feat = input_dims * n_agents
    fc1_dims, fc2_dims, fc3_dims, fc4_dims = 64, 64, 32, 32
    n_actions = 8

    key = jax.random.PRNGKey(0)
    k_state, k_params, k_state2 = jax.random.split(key, 3)
    params = init_params(k_params, in_feat, fc1_dims, fc2_dims, fc3_dims,
                         fc4_dims, n_actions)

    # Tolerances: the Mosaic kernel and the XLA reference may use different MXU
    # f32-matmul pass modes, so the f32-weight check uses 2e-2 on tanh outputs
    # in [-1, 1]; the bf16-weight path adds weight quantization -> 5e-2.
    TOL_F32, TOL_BF16 = 2e-2, 5e-2

    # 1) tiny batch (single grid step), f32 weights
    B = 8
    state = jax.random.normal(k_state, (B, in_feat), jnp.float32)
    out = jax.block_until_ready(actor_forward(state, params, use_bf16=False))
    ref = reference_forward(state, params)
    assert out.shape == (B, n_actions)
    assert float(jnp.max(jnp.abs(out - ref))) < TOL_F32, "mismatch (B=8, f32)"

    # 2) non-divisible batch -> padded rows + two pipelined grid steps, f32
    B2 = 300
    state2 = jax.random.normal(k_state2, (B2, in_feat), jnp.float32)
    out2 = jax.block_until_ready(actor_forward(state2, params, use_bf16=False))
    ref2 = reference_forward(state2, params)
    assert out2.shape == (B2, n_actions)
    assert float(jnp.max(jnp.abs(out2 - ref2))) < TOL_F32, "mismatch (B=300, f32)"

    # 3) default bf16-weight path (MXU-native on v6e/v7x), looser tolerance
    out3 = jax.block_until_ready(actor_forward(state2, params))
    assert out3.shape == (B2, n_actions)
    assert float(jnp.max(jnp.abs(out3 - ref2))) < TOL_BF16, "mismatch (B=300, bf16)"

    print("KERNEL_OK")
</pallas_src>

<mosaic_0001>
module attributes {stable_mosaic.version = 11 : i64} {
  func.func @actor_kernel(%arg0: i32, %arg1: memref<8x32xf32, #tpu.memory_space<vmem>>, %arg2: memref<224x128xf32, #tpu.memory_space<vmem>>, %arg3: memref<24x128xf32, #tpu.memory_space<vmem>>, %arg4: memref<8x8xf32, #tpu.memory_space<vmem>>) attributes {dimension_semantics = [#tpu.dimension_semantics<parallel>], iteration_bounds = array<i64: 1>, scalar_prefetch = 0 : i64, scratch_operands = 0 : i64, tpu.core_type = #tpu.core_type<tc>, window_params = [{transform_indices = @transform_0, window_bounds = array<i64: 8, 32>}, {pipeline_mode = #tpu.pipeline_mode<synchronous>, transform_indices = @transform_1, window_bounds = array<i64: 224, 128>}, {pipeline_mode = #tpu.pipeline_mode<synchronous>, transform_indices = @transform_2, window_bounds = array<i64: 24, 128>}, {transform_indices = @transform_3, window_bounds = array<i64: 8, 8>}]} {
    %c0 = arith.constant 0 : index
    %c0_0 = arith.constant 0 : index
    %0 = vector.load %arg1[%c0, %c0_0] : memref<8x32xf32, #tpu.memory_space<vmem>>, vector<8x32xf32>
    %c0_1 = arith.constant 0 : index
    %c0_2 = arith.constant 0 : index
    %1 = vector.load %arg2[%c0_1, %c0_2] : memref<224x128xf32, #tpu.memory_space<vmem>>, vector<32x64xf32>
    %c0_3 = arith.constant 0 : index
    %c0_4 = arith.constant 0 : index
    %2 = vector.load %arg3[%c0_3, %c0_4] : memref<24x128xf32, #tpu.memory_space<vmem>>, vector<1x64xf32>
    %c1 = arith.constant 1 : index
    %c0_5 = arith.constant 0 : index
    %3 = vector.load %arg3[%c1, %c0_5] : memref<24x128xf32, #tpu.memory_space<vmem>>, vector<1x64xf32>
    %c2 = arith.constant 2 : index
    %c0_6 = arith.constant 0 : index
    %4 = vector.load %arg3[%c2, %c0_6] : memref<24x128xf32, #tpu.memory_space<vmem>>, vector<1x64xf32>
    %cst = arith.constant dense<0.000000e+00> : vector<8x64xf32>
    %5 = tpu.matmul %0, %1, %cst {dimension_numbers = #tpu.dot_dimension_numbers<[1], [0], [0], [1], [0, 0, 1, 1], [], []>} : vector<8x32xf32>, vector<32x64xf32>, vector<8x64xf32> -> vector<8x64xf32>
    %6 = vector.broadcast %2 : vector<1x64xf32> to vector<8x64xf32>
    %7 = arith.addf %5, %6 : vector<8x64xf32>
    %cst_7 = arith.constant dense<0.000000e+00> : vector<8xf32>
    %8 = vector.multi_reduction <add>, %7, %cst_7 [1] : vector<8x64xf32> to vector<8xf32>
    %9 = vector.shape_cast %8 : vector<8xf32> to vector<8x1xf32>
    %cst_8 = arith.constant 6.400000e+01 : f32
    %10 = vector.broadcast %cst_8 : f32 to vector<8x1xf32>
    %11 = arith.divf %9, %10 : vector<8x1xf32>
    %12 = arith.mulf %7, %7 : vector<8x64xf32>
    %cst_9 = arith.constant dense<0.000000e+00> : vector<8xf32>
    %13 = vector.multi_reduction <add>, %12, %cst_9 [1] : vector<8x64xf32> to vector<8xf32>
    %14 = vector.shape_cast %13 : vector<8xf32> to vector<8x1xf32>
    %cst_10 = arith.constant 6.400000e+01 : f32
    %15 = vector.broadcast %cst_10 : f32 to vector<8x1xf32>
    %16 = arith.divf %14, %15 : vector<8x1xf32>
    %17 = arith.mulf %11, %11 : vector<8x1xf32>
    %18 = arith.subf %16, %17 : vector<8x1xf32>
    %19 = vector.broadcast %11 : vector<8x1xf32> to vector<8x64xf32>
    %20 = arith.subf %7, %19 : vector<8x64xf32>
    %cst_11 = arith.constant 9.99999974E-6 : f32
    %21 = vector.broadcast %cst_11 : f32 to vector<8x1xf32>
    %22 = arith.addf %18, %21 : vector<8x1xf32>
    %23 = math.rsqrt %22 : vector<8x1xf32>
    %24 = vector.broadcast %23 : vector<8x1xf32> to vector<8x64xf32>
    %25 = arith.mulf %20, %24 : vector<8x64xf32>
    %26 = vector.broadcast %3 : vector<1x64xf32> to vector<8x64xf32>
    %27 = arith.mulf %25, %26 : vector<8x64xf32>
    %28 = vector.broadcast %4 : vector<1x64xf32> to vector<8x64xf32>
    %29 = arith.addf %27, %28 : vector<8x64xf32>
    %cst_12 = arith.constant 0.000000e+00 : f32
    %30 = vector.broadcast %cst_12 : f32 to vector<8x64xf32>
    %31 = arith.maximumf %29, %30 : vector<8x64xf32>
    %c32 = arith.constant 32 : index
    %c0_13 = arith.constant 0 : index
    %32 = vector.load %arg2[%c32, %c0_13] : memref<224x128xf32, #tpu.memory_space<vmem>>, vector<64x64xf32>
    %c4 = arith.constant 4 : index
    %c0_14 = arith.constant 0 : index
    %33 = vector.load %arg3[%c4, %c0_14] : memref<24x128xf32, #tpu.memory_space<vmem>>, vector<1x64xf32>
    %c5 = arith.constant 5 : index
    %c0_15 = arith.constant 0 : index
    %34 = vector.load %arg3[%c5, %c0_15] : memref<24x128xf32, #tpu.memory_space<vmem>>, vector<1x64xf32>
    %c6 = arith.constant 6 : index
    %c0_16 = arith.constant 0 : index
    %35 = vector.load %arg3[%c6, %c0_16] : memref<24x128xf32, #tpu.memory_space<vmem>>, vector<1x64xf32>
    %cst_17 = arith.constant dense<0.000000e+00> : vector<8x64xf32>
    %36 = tpu.matmul %31, %32, %cst_17 {dimension_numbers = #tpu.dot_dimension_numbers<[1], [0], [0], [1], [0, 0, 1, 1], [], []>} : vector<8x64xf32>, vector<64x64xf32>, vector<8x64xf32> -> vector<8x64xf32>
    %37 = vector.broadcast %33 : vector<1x64xf32> to vector<8x64xf32>
    %38 = arith.addf %36, %37 : vector<8x64xf32>
    %cst_18 = arith.constant dense<0.000000e+00> : vector<8xf32>
    %39 = vector.multi_reduction <add>, %38, %cst_18 [1] : vector<8x64xf32> to vector<8xf32>
    %40 = vector.shape_cast %39 : vector<8xf32> to vector<8x1xf32>
    %cst_19 = arith.constant 6.400000e+01 : f32
    %41 = vector.broadcast %cst_19 : f32 to vector<8x1xf32>
    %42 = arith.divf %40, %41 : vector<8x1xf32>
    %43 = arith.mulf %38, %38 : vector<8x64xf32>
    %cst_20 = arith.constant dense<0.000000e+00> : vector<8xf32>
    %44 = vector.multi_reduction <add>, %43, %cst_20 [1] : vector<8x64xf32> to vector<8xf32>
    %45 = vector.shape_cast %44 : vector<8xf32> to vector<8x1xf32>
    %cst_21 = arith.constant 6.400000e+01 : f32
    %46 = vector.broadcast %cst_21 : f32 to vector<8x1xf32>
    %47 = arith.divf %45, %46 : vector<8x1xf32>
    %48 = arith.mulf %42, %42 : vector<8x1xf32>
    %49 = arith.subf %47, %48 : vector<8x1xf32>
    %50 = vector.broadcast %42 : vector<8x1xf32> to vector<8x64xf32>
    %51 = arith.subf %38, %50 : vector<8x64xf32>
    %cst_22 = arith.constant 9.99999974E-6 : f32
    %52 = vector.broadcast %cst_22 : f32 to vector<8x1xf32>
    %53 = arith.addf %49, %52 : vector<8x1xf32>
    %54 = math.rsqrt %53 : vector<8x1xf32>
    %55 = vector.broadcast %54 : vector<8x1xf32> to vector<8x64xf32>
    %56 = arith.mulf %51, %55 : vector<8x64xf32>
    %57 = vector.broadcast %34 : vector<1x64xf32> to vector<8x64xf32>
    %58 = arith.mulf %56, %57 : vector<8x64xf32>
    %59 = vector.broadcast %35 : vector<1x64xf32> to vector<8x64xf32>
    %60 = arith.addf %58, %59 : vector<8x64xf32>
    %cst_23 = arith.constant 0.000000e+00 : f32
    %61 = vector.broadcast %cst_23 : f32 to vector<8x64xf32>
    %62 = arith.maximumf %60, %61 : vector<8x64xf32>
    %c96 = arith.constant 96 : index
    %c0_24 = arith.constant 0 : index
    %63 = vector.load %arg2[%c96, %c0_24] : memref<224x128xf32, #tpu.memory_space<vmem>>, vector<64x32xf32>
    %c8 = arith.constant 8 : index
    %c0_25 = arith.constant 0 : index
    %64 = vector.load %arg3[%c8, %c0_25] : memref<24x128xf32, #tpu.memory_space<vmem>>, vector<1x32xf32>
    %c9 = arith.constant 9 : index
    %c0_26 = arith.constant 0 : index
    %65 = vector.load %arg3[%c9, %c0_26] : memref<24x128xf32, #tpu.memory_space<vmem>>, vector<1x32xf32>
    %c10 = arith.constant 10 : index
    %c0_27 = arith.constant 0 : index
    %66 = vector.load %arg3[%c10, %c0_27] : memref<24x128xf32, #tpu.memory_space<vmem>>, vector<1x32xf32>
    %cst_28 = arith.constant dense<0.000000e+00> : vector<8x32xf32>
    %67 = tpu.matmul %62, %63, %cst_28 {dimension_numbers = #tpu.dot_dimension_numbers<[1], [0], [0], [1], [0, 0, 1, 1], [], []>} : vector<8x64xf32>, vector<64x32xf32>, vector<8x32xf32> -> vector<8x32xf32>
    %68 = vector.broadcast %64 : vector<1x32xf32> to vector<8x32xf32>
    %69 = arith.addf %67, %68 : vector<8x32xf32>
    %cst_29 = arith.constant dense<0.000000e+00> : vector<8xf32>
    %70 = vector.multi_reduction <add>, %69, %cst_29 [1] : vector<8x32xf32> to vector<8xf32>
    %71 = vector.shape_cast %70 : vector<8xf32> to vector<8x1xf32>
    %cst_30 = arith.constant 3.200000e+01 : f32
    %72 = vector.broadcast %cst_30 : f32 to vector<8x1xf32>
    %73 = arith.divf %71, %72 : vector<8x1xf32>
    %74 = arith.mulf %69, %69 : vector<8x32xf32>
    %cst_31 = arith.constant dense<0.000000e+00> : vector<8xf32>
    %75 = vector.multi_reduction <add>, %74, %cst_31 [1] : vector<8x32xf32> to vector<8xf32>
    %76 = vector.shape_cast %75 : vector<8xf32> to vector<8x1xf32>
    %cst_32 = arith.constant 3.200000e+01 : f32
    %77 = vector.broadcast %cst_32 : f32 to vector<8x1xf32>
    %78 = arith.divf %76, %77 : vector<8x1xf32>
    %79 = arith.mulf %73, %73 : vector<8x1xf32>
    %80 = arith.subf %78, %79 : vector<8x1xf32>
    %81 = vector.broadcast %73 : vector<8x1xf32> to vector<8x32xf32>
    %82 = arith.subf %69, %81 : vector<8x32xf32>
    %cst_33 = arith.constant 9.99999974E-6 : f32
    %83 = vector.broadcast %cst_33 : f32 to vector<8x1xf32>
    %84 = arith.addf %80, %83 : vector<8x1xf32>
    %85 = math.rsqrt %84 : vector<8x1xf32>
    %86 = vector.broadcast %85 : vector<8x1xf32> to vector<8x32xf32>
    %87 = arith.mulf %82, %86 : vector<8x32xf32>
    %88 = vector.broadcast %65 : vector<1x32xf32> to vector<8x32xf32>
    %89 = arith.mulf %87, %88 : vector<8x32xf32>
    %90 = vector.broadcast %66 : vector<1x32xf32> to vector<8x32xf32>
    %91 = arith.addf %89, %90 : vector<8x32xf32>
    %cst_34 = arith.constant 0.000000e+00 : f32
    %92 = vector.broadcast %cst_34 : f32 to vector<8x32xf32>
    %93 = arith.maximumf %91, %92 : vector<8x32xf32>
    %c160 = arith.constant 160 : index
    %c0_35 = arith.constant 0 : index
    %94 = vector.load %arg2[%c160, %c0_35] : memref<224x128xf32, #tpu.memory_space<vmem>>, vector<32x32xf32>
    %c12 = arith.constant 12 : index
    %c0_36 = arith.constant 0 : index
    %95 = vector.load %arg3[%c12, %c0_36] : memref<24x128xf32, #tpu.memory_space<vmem>>, vector<1x32xf32>
    %c13 = arith.constant 13 : index
    %c0_37 = arith.constant 0 : index
    %96 = vector.load %arg3[%c13, %c0_37] : memref<24x128xf32, #tpu.memory_space<vmem>>, vector<1x32xf32>
    %c14 = arith.constant 14 : index
    %c0_38 = arith.constant 0 : index
    %97 = vector.load %arg3[%c14, %c0_38] : memref<24x128xf32, #tpu.memory_space<vmem>>, vector<1x32xf32>
    %cst_39 = arith.constant dense<0.000000e+00> : vector<8x32xf32>
    %98 = tpu.matmul %93, %94, %cst_39 {dimension_numbers = #tpu.dot_dimension_numbers<[1], [0], [0], [1], [0, 0, 1, 1], [], []>} : vector<8x32xf32>, vector<32x32xf32>, vector<8x32xf32> -> vector<8x32xf32>
    %99 = vector.broadcast %95 : vector<1x32xf32> to vector<8x32xf32>
    %100 = arith.addf %98, %99 : vector<8x32xf32>
    %cst_40 = arith.constant dense<0.000000e+00> : vector<8xf32>
    %101 = vector.multi_reduction <add>, %100, %cst_40 [1] : vector<8x32xf32> to vector<8xf32>
    %102 = vector.shape_cast %101 : vector<8xf32> to vector<8x1xf32>
    %cst_41 = arith.constant 3.200000e+01 : f32
    %103 = vector.broadcast %cst_41 : f32 to vector<8x1xf32>
    %104 = arith.divf %102, %103 : vector<8x1xf32>
    %105 = arith.mulf %100, %100 : vector<8x32xf32>
    %cst_42 = arith.constant dense<0.000000e+00> : vector<8xf32>
    %106 = vector.multi_reduction <add>, %105, %cst_42 [1] : vector<8x32xf32> to vector<8xf32>
    %107 = vector.shape_cast %106 : vector<8xf32> to vector<8x1xf32>
    %cst_43 = arith.constant 3.200000e+01 : f32
    %108 = vector.broadcast %cst_43 : f32 to vector<8x1xf32>
    %109 = arith.divf %107, %108 : vector<8x1xf32>
    %110 = arith.mulf %104, %104 : vector<8x1xf32>
    %111 = arith.subf %109, %110 : vector<8x1xf32>
    %112 = vector.broadcast %104 : vector<8x1xf32> to vector<8x32xf32>
    %113 = arith.subf %100, %112 : vector<8x32xf32>
    %cst_44 = arith.constant 9.99999974E-6 : f32
    %114 = vector.broadcast %cst_44 : f32 to vector<8x1xf32>
    %115 = arith.addf %111, %114 : vector<8x1xf32>
    %116 = math.rsqrt %115 : vector<8x1xf32>
    %117 = vector.broadcast %116 : vector<8x1xf32> to vector<8x32xf32>
    %118 = arith.mulf %113, %117 : vector<8x32xf32>
    %119 = vector.broadcast %96 : vector<1x32xf32> to vector<8x32xf32>
    %120 = arith.mulf %118, %119 : vector<8x32xf32>
    %121 = vector.broadcast %97 : vector<1x32xf32> to vector<8x32xf32>
    %122 = arith.addf %120, %121 : vector<8x32xf32>
    %cst_45 = arith.constant 0.000000e+00 : f32
    %123 = vector.broadcast %cst_45 : f32 to vector<8x32xf32>
    %124 = arith.maximumf %122, %123 : vector<8x32xf32>
    %c192 = arith.constant 192 : index
    %c0_46 = arith.constant 0 : index
    %125 = vector.load %arg2[%c192, %c0_46] : memref<224x128xf32, #tpu.memory_space<vmem>>, vector<32x8xf32>
    %c16 = arith.constant 16 : index
    %c0_47 = arith.constant 0 : index
    %126 = vector.load %arg3[%c16, %c0_47] : memref<24x128xf32, #tpu.memory_space<vmem>>, vector<1x8xf32>
    %cst_48 = arith.constant dense<0.000000e+00> : vector<8x8xf32>
    %127 = tpu.matmul %124, %125, %cst_48 {dimension_numbers = #tpu.dot_dimension_numbers<[1], [0], [0], [1], [0, 0, 1, 1], [], []>} : vector<8x32xf32>, vector<32x8xf32>, vector<8x8xf32> -> vector<8x8xf32>
    %128 = vector.broadcast %126 : vector<1x8xf32> to vector<8x8xf32>
    %129 = arith.addf %127, %128 : vector<8x8xf32>
    %130 = math.tanh %129 : vector<8x8xf32>
    %c0_49 = arith.constant 0 : index
    %c0_50 = arith.constant 0 : index
    %131 = vector.load %arg4[%c0_49, %c0_50] : memref<8x8xf32, #tpu.memory_space<vmem>>, vector<8x8xf32>
    tpu.vector_store %arg4[%c0_49, %c0_50], %130 {strides = array<i32>} : memref<8x8xf32, #tpu.memory_space<vmem>>, vector<8x8xf32>,
    return
  }
  func.func @transform_0(%arg0: i32) -> (i32, i32) {
    %c0_i32 = arith.constant 0 : i32
    %c0_i32_0 = arith.constant 0 : i32
    return %arg0, %c0_i32 : i32, i32
  }
  func.func @transform_1(%arg0: i32) -> (i32, i32) {
    %c0_i32 = arith.constant 0 : i32
    %c0_i32_0 = arith.constant 0 : i32
    %c0_i32_1 = arith.constant 0 : i32
    return %c0_i32, %c0_i32_0 : i32, i32
  }
  func.func @transform_2(%arg0: i32) -> (i32, i32) {
    %c0_i32 = arith.constant 0 : i32
    %c0_i32_0 = arith.constant 0 : i32
    %c0_i32_1 = arith.constant 0 : i32
    return %c0_i32, %c0_i32_0 : i32, i32
  }
  func.func @transform_3(%arg0: i32) -> (i32, i32) {
    %c0_i32 = arith.constant 0 : i32
    %c0_i32_0 = arith.constant 0 : i32
    return %arg0, %c0_i32 : i32, i32
  }
}

</mosaic_0001>

<bundles_post_ra>
// kernel: tpu_custom_call.1
= control target key start
LH: loop header
LB: loop body
LE: loop exit
PB: predicated region body
PF: predicated region fallthrough
CT: control target
= control target key end

     0   :  { %8 = vsyncpa [#allocation3], 0  ;;  %s1005_s0 = inlined_call_operand.hbm [shape: f32[8,32], index: 0, kind: input, shape index: {}]   ;;  %s1006_s1 = inlined_call_operand.hbm [shape: f32[224,128], index: 1, kind: input, shape index: {}]   ;;  %s1007_s2 = inlined_call_operand.hbm [shape: f32[24,128], index: 2, kind: input, shape index: {}]   ;;  %s1008_s3 = inlined_call_operand.hbm [shape: f32[8,8], index: 3, kind: output, shape index: {}]  }
   0x1   :  { %9 = vsyncpa [#allocation6], 0 }
   0x2   :  { %10 = vsyncpa [#allocation4], 0  ;;  %s885_s12 = smov [#allocation5]   ;;  %s791_s16 = scalar_lea.hbm %s1006_s1, 3584 }
   0x3   :  { %s26_s13 = sshll.u32 %s885_s12, 4  ;;  %p792_p0 = scmp.ne.s32.totalorder %s1006_s1, %s791_s16  ;;  %s27_s13 = int_to_ptr.vmem [resolvable:$true] %s26_s13 }
   0x4   :  { %p795_p1 = scmp.lt.u32.totalorder %s791_s16, %s1006_s1 }
   0x6   :  { %p797_p2 = pnand %p795_p1, %p792_p0 }
   0x8   :  { %800 = shalt.err (!%p797_p2)
}
   0x9   :  { %s801_s21 = scalar_lea.vmem %s27_s13, 3584  ;;  %p806_p4 = scmp.lt.s32.totalorder %s27_s13, %s27_s13 }
   0xa   :  { %p802_p3 = scmp.ne.s32.totalorder %s27_s13, %s801_s21  ;;  %p807_p5 = scmp.lt.s32.totalorder %s801_s21, %s801_s21 }
   0xc   :  { %p808_p6 = por %p807_p5, %p806_p4 }
   0xe   :  { %p809_p7 = pnand %p808_p6, %p802_p3 }
  0x10   :  { %812 = shalt.err (!%p809_p7)
}
  0x11   :  { %s886_s22 = smov 128   ;;  %s887_s23 = smov 8  }
  0x12   :  { %32 = dma.hbm_to_vmem [thread:$0]  %s1006_s1, 3584, %s27_s13, [#allocation6], %s886_s22, %s886_s22, %s887_s23  }
  0x13   :  { %s888_s26 = smov [#allocation2]   ;;  %s889_s28 = smov [#allocation7]  }
  0x14   :  { %s17_s27 = sshll.u32 %s888_s26, 4  ;;  %s38_s29 = sshll.u32 %s889_s28, 4  ;;  %s18_s27 = int_to_ptr.vmem [resolvable:$true] %s17_s27  ;;  %s39_s29 = int_to_ptr.vmem [resolvable:$true] %s38_s29 }
  0x15   :  { %s813_s5 = scalar_lea.hbm %s1005_s0, 128 }
  0x16   :  { %p814_p8 = scmp.ne.s32.totalorder %s1005_s0, %s813_s5  ;;  %p817_p9 = scmp.lt.u32.totalorder %s813_s5, %s1005_s0 }
  0x18   :  { %p819_p10 = pnand %p817_p9, %p814_p8 }
  0x1a   :  { %822 = shalt.err (!%p819_p10)
}
  0x1b   :  { %s823_s1 = scalar_lea.vmem %s18_s27, 128  ;;  %p828_p12 = scmp.lt.s32.totalorder %s18_s27, %s18_s27 }
  0x1c   :  { %p824_p11 = scmp.ne.s32.totalorder %s18_s27, %s823_s1  ;;  %p829_p13 = scmp.lt.s32.totalorder %s823_s1, %s823_s1 }
  0x1e   :  { %p830_p0 = por %p829_p13, %p828_p12 }
  0x20   :  { %p831_p1 = pnand %p830_p0, %p824_p11 }
  0x22   :  { %834 = shalt.err (!%p831_p1)
}
  0x23   :  { %20 = dma.hbm_to_vmem [thread:$0]  %s1005_s0, 128, %s18_s27, [#allocation3]  }
  0x24   :  { %s835_s14 = scalar_lea.hbm %s1007_s2, 384 }
  0x25   :  { %p836_p2 = scmp.ne.s32.totalorder %s1007_s2, %s835_s14  ;;  %p839_p3 = scmp.lt.u32.totalorder %s835_s14, %s1007_s2 }
  0x27   :  { %p841_p4 = pnand %p839_p3, %p836_p2 }
  0x29   :  { %844 = shalt.err (!%p841_p4)
}
  0x2a   :  { %s845_s19 = scalar_lea.vmem %s39_s29, 384  ;;  %p850_p6 = scmp.lt.s32.totalorder %s39_s29, %s39_s29 }
  0x2b   :  { %p846_p5 = scmp.ne.s32.totalorder %s39_s29, %s845_s19  ;;  %p851_p7 = scmp.lt.s32.totalorder %s845_s19, %s845_s19 }
  0x2d   :  { %p852_p8 = por %p851_p7, %p850_p6 }
  0x2f   :  { %p853_p9 = pnand %p852_p8, %p846_p5 }
  0x31   :  { %856 = shalt.err (!%p853_p9)
}
  0x32   :  { %44 = dma.hbm_to_vmem [thread:$0]  %s1007_s2, 384, %s39_s29, [#allocation6], %s886_s22, %s886_s22, %s887_s23  }
  0x33   :  { %879 = dma.done.wait [#allocation3], 128  }
  0x34   :  { %880 = vsyncadd [#allocation3], 4294967168 }
  0x35   :  { %881 = dma.done.wait [#allocation6], 3968  }
  0x36   :  { %882 = vsyncadd [#allocation6], 4294963328  ;;  %v890_v0 = vmov 0.0|0.0   ;;  %vm891_vm0 = vmmov 0   ;;  %v892_v1 = vmov 0.0   ;;  %v55_v2 = vld [vmem:[#allocation5] sm:$0xff] }
  0x37   :  { %730 = vmatprep.subr.bf16.mxu0 %v890_v0  ;;  %667 = vmatprep.mubr.msk.f32.mxu0 %vm891_vm0, %v892_v1  ;;  %v56_v3 = vld [vmem:[#allocation5 + $0x8] sm:$0xff]  ;;  %v57_v4 = vld [vmem:[#allocation5 + $0x10] sm:$0xff]  ;;  %v58_v6 = vld [vmem:[#allocation5 + $0x18] sm:$0xff]  ;;  %vm66_vm1 = vcmask 261120   ;;  %vm140_vm2 = vcmask 523264   ;;  %s893_s2 = smov [#allocation8]  }
  0x38   :  { %736 = vmatprep.subr.bf16.mxu1 %v890_v0  ;;  %686 = vmatprep.mubr.msk.f32.mxu1 %vm891_vm0, %v892_v1  ;;  %v731_v5 = vpack.c.bf16 %v56_v3, %v55_v2  ;;  %v734_v7 = vpack.c.bf16 %v58_v6, %v57_v4  ;;  %v54_v8 = vld [vmem:[#allocation2] sm:$0xff]  ;;  %v608_v9 = vld [vmem:[#allocation7] ss:$0 sm:$0xff]  ;;  %v169_v17 = vld [vmem:[#allocation5 + $0x28] sm:$0xff]  ;;  %s598_s21 = sshll.u32 %s893_s2, 4  ;;  %vm590_vm3 = vcmask 64512   ;;  %s599_s21 = int_to_ptr.vmem [resolvable:$true] %s598_s21 }
  0x39   :  { %v168_v16 = vld [vmem:[#allocation5 + $0x20] sm:$0xff]  ;;  %v170_v18 = vld [vmem:[#allocation5 + $0x30] sm:$0xff]  ;;  %v171_v20 = vld [vmem:[#allocation5 + $0x38] sm:$0xff]  ;;  %s857_s22 = scalar_lea.vmem %s599_s21, 128  ;;  %p862_p11 = scmp.lt.s32.totalorder %s599_s21, %s599_s21 }
  0x3a   :  { %732 = vmatpush3.bf16.msra.mxu0 %v731_v5  ;;  %v737_v19 = vpack.c.bf16 %v169_v17, %v168_v16  ;;  %v740_v21 = vpack.c.bf16 %v171_v20, %v170_v18  ;;  %v172_v22 = vld [vmem:[#allocation5 + $0x40] sm:$0xff]  ;;  %v173_v23 = vld [vmem:[#allocation5 + $0x48] sm:$0xff]  ;;  %v174_v25 = vld [vmem:[#allocation5 + $0x50] sm:$0xff]  ;;  %p858_p10 = scmp.ne.s32.totalorder %s599_s21, %s857_s22  ;;  %p863_p12 = scmp.lt.s32.totalorder %s857_s22, %s857_s22 }
  0x3b   :  { %733 = vmatprep.subr.bf16.mxu0 %v890_v0  ;;  %v743_v24 = vpack.c.bf16 %v173_v23, %v172_v22  ;;  %v175_v26 = vld [vmem:[#allocation5 + $0x58] sm:$0xff]  ;;  %v610_v37 = vld [vmem:[#allocation7 + $0x1] ss:$0 sm:$0xff]  ;;  %v611_v39 = vld [vmem:[#allocation7 + $0x2] ss:$0 sm:$0xff] }
  0x3c   :  { %738 = vmatpush3.bf16.msra.mxu1 %v737_v19  ;;  %v746_v27 = vpack.c.bf16 %v175_v26, %v174_v25  ;;  %v612_v43 = vld [vmem:[#allocation7 + $0x4] ss:$0 sm:$0xff]  ;;  %v283_v51 = vld [vmem:[#allocation5 + $0x68] sm:$0xff]  ;;  %v284_v53 = vld [vmem:[#allocation5 + $0x70] sm:$0xff]  ;;  %p864_p13 = por %p863_p12, %p862_p11 }
  0x3d   :  { %739 = vmatprep.subr.bf16.mxu1 %v890_v0  ;;  %v282_v50 = vld [vmem:[#allocation5 + $0x60] sm:$0xff]  ;;  %v285_v54 = vld [vmem:[#allocation5 + $0x78] sm:$0xff]  ;;  %v287_v57 = vld [vmem:[#allocation5 + $0x88] sm:$0xff] }
  0x3e   :  { %735 = vmatpush3.bf16.msra.mxu0 %v734_v7  ;;  %v749_v52 = vpack.c.bf16 %v283_v51, %v282_v50  ;;  %v752_v55 = vpack.c.bf16 %v285_v54, %v284_v53  ;;  %v286_v56 = vld [vmem:[#allocation5 + $0x80] sm:$0xff]  ;;  %v288_v59 = vld [vmem:[#allocation5 + $0x90] sm:$0xff]  ;;  %v289_v60 = vld [vmem:[#allocation5 + $0x98] sm:$0xff]  ;;  %p865_p0 = pnand %p864_p13, %p858_p10 }
  0x3f   :  { %748 = vmatprep.subr.bf16.mxu0 %v890_v0  ;;  %v755_v58 = vpack.c.bf16 %v287_v57, %v286_v56  ;;  %v758_v61 = vpack.c.bf16 %v289_v60, %v288_v59  ;;  %v397_v22 = vld [vmem:[#allocation5 + $0xa0] sm:$0xff]  ;;  %v398_v23 = vld [vmem:[#allocation5 + $0xa8] sm:$0xff]  ;;  %v399_v25 = vld [vmem:[#allocation5 + $0xb0] sm:$0xff] }
  0x40   :  { %741 = vmatpush3.bf16.msra.mxu1 %v740_v21  ;;  %v400_v26 = vld [vmem:[#allocation5 + $0xb8] sm:$0xff]  ;;  %v508_v50 = vld [vmem:[#allocation5 + $0xc8] sm:$0xff] }
  0x41   :  { %668 = vmatmul.mubr.msk.f32.vlgmr.msra.gmra.mrb[0].mxu0 %vm66_vm1, %v54_v8  ;;  %742 = vmatprep.subr.bf16.mxu1 %v890_v0  ;;  %v510_v53 = vld [vmem:[#allocation5 + $0xd8] sm:$0xff] }
  0x42   :  { %705 = vmatprep.mubr.msk.f32.mxu0 %vm891_vm0, %v892_v1  ;;  %750 = vmatpush3.bf16.msra.mxu0 %v749_v52  ;;  %v509_v52 = vld [vmem:[#allocation5 + $0xd0] sm:$0xff] }
  0x43   :  { %751 = vmatprep.subr.bf16.mxu0 %v890_v0  ;;  %v770_v54 = vpack.c.bf16 %v510_v53, %v509_v52 }
  0x44   :  { %744 = vmatpush3.bf16.msra.mxu1 %v743_v24  ;;  %v761_v24 = vpack.c.bf16 %v398_v23, %v397_v22 }
  0x45   :  { %745 = vmatprep.subr.bf16.mxu1 %v890_v0 }
  0x46   :  { %753 = vmatpush3.bf16.msra.mxu0 %v752_v55 }
  0x47   :  { %754 = vmatprep.subr.bf16.mxu0 %v890_v0 }
  0x48   :  { %747 = vmatpush3.bf16.msra.mxu1 %v746_v27  ;;  %v764_v27 = vpack.c.bf16 %v400_v26, %v399_v25 }
  0x49   :  { %760 = vmatprep.subr.bf16.mxu1 %v890_v0 }
  0x4a   :  { %756 = vmatpush3.bf16.msra.mxu0 %v755_v58 }
  0x4b   :  { %757 = vmatprep.subr.bf16.mxu0 %v890_v0 }
  0x4e   :  { %759 = vmatpush3.bf16.msra.mxu0 %v758_v61 }
  0x4f   :  { %766 = vmatprep.subr.bf16.mxu0 %v890_v0 }
 0x114   :  { %v136_v10 = vpop.f32.mrb[0].mxu0 }
 0x115   :  { %v137_v11 = vadd.f32 %v608_v9, %v136_v10  ;;  %v669_v12 = vpop.f32.mrb[1].mxu0  ;;  %v614_v9 = vld [vmem:[#allocation7 + $0x5] ss:$0 sm:$0xff] }
 0x117   :  { %v141_v13 = vsel %vm140_vm2, %v137_v11, 0.0  ;;  %v146_v14 = vmul.f32 %v137_v11, %v137_v11 }
 0x118   :  { %142 = vadd.xlane.f32.xlu0 %v141_v13 }
 0x119   :  { %v147_v15 = vsel %vm140_vm2, %v146_v14, 0.0 }
 0x11c   :  { %148 = vadd.xlane.f32.xlu0 %v147_v15  ;;  %v616_v15 = vld [vmem:[#allocation7 + $0x8] ss:$0 sm:$0xff] }
 0x1a5   :  { %v143_v28 = vpop.xlane.xlu0 %142 }
 0x1a6   :  { %v145_v29 = vmul.f32 0.015625, %v143_v28 }
 0x1a8   :  { %v151_v31 = vmul.f32 %v145_v29, %v145_v29  ;;  %v153_v35 = vsub.f32 %v137_v11, %v145_v29  ;;  %v615_v11 = vld [vmem:[#allocation7 + $0x6] ss:$0 sm:$0xff] }
 0x1a9   :  { %v149_v30 = vpop.xlane.xlu0 %148 }
 0x1aa   :  { %v150_v32 = vmul.f32 0.015625, %v149_v30 }
 0x1ac   :  { %v152_v33 = vsub.f32 %v150_v32, %v151_v31 }
 0x1ae   :  { %v154_v34 = vadd.f32 1e-05, %v152_v33 }
 0x1b0   :  { %781 = vrsqrt.f32 %v154_v34 }
 0x1ba   :  { %v782_v36 = vpop.eup %781 }
 0x1bb   :  { %v156_v38 = vmul.f32 %v782_v36, %v153_v35  ;;  %v618_v36 = vld [vmem:[#allocation7 + $0x9] ss:$0 sm:$0xff] }
 0x1bd   :  { %v161_v40 = vmul.f32 %v610_v37, %v156_v38  ;;  %v619_v38 = vld [vmem:[#allocation7 + $0xa] ss:$0 sm:$0xff] }
 0x1bf   :  { %v166_v41 = vadd.f32 %v611_v39, %v161_v40 }
 0x1c1   :  { %v167_v42 = vmax.f32 %v166_v41, 0.0 }
 0x1c3   :  { %687 = vmatmul.mubr.msk.f32.vlgmr.msra.gmra.mrb[0].mxu1 %vm140_vm2, %v167_v42  ;;  %v620_v42 = vld [vmem:[#allocation7 + $0xc] ss:$0 sm:$0xff] }
 0x1c4   :  { %716 = vmatprep.mubr.msk.f32.mxu1 %vm891_vm0, %v892_v1  ;;  %762 = vmatpush3.bf16.msra.mxu1 %v761_v24 }
 0x1c5   :  { %763 = vmatprep.subr.bf16.mxu1 %v890_v0 }
 0x1c8   :  { %765 = vmatpush3.bf16.msra.mxu1 %v764_v27 }
 0x296   :  { %v252_v44 = vpop.f32.mrb[0].mxu1 }
 0x297   :  { %v253_v45 = vadd.f32 %v612_v43, %v252_v44  ;;  %v688_v46 = vpop.f32.mrb[1].mxu1 }
 0x299   :  { %v256_v47 = vsel %vm140_vm2, %v253_v45, 0.0  ;;  %v260_v48 = vmul.f32 %v253_v45, %v253_v45 }
 0x29a   :  { %257 = vadd.xlane.f32.xlu1 %v256_v47 }
 0x29b   :  { %v261_v49 = vsel %vm140_vm2, %v260_v48, 0.0 }
 0x29e   :  { %262 = vadd.xlane.f32.xlu1 %v261_v49  ;;  %v507_v49 = vld [vmem:[#allocation5 + $0xc0] sm:$0xff] }
 0x29f   :  { %v767_v51 = vpack.c.bf16 %v508_v50, %v507_v49 }
 0x327   :  { %v258_v62 = vpop.xlane.xlu1 %257 }
 0x328   :  { %v259_v63 = vmul.f32 0.015625, %v258_v62 }
 0x32a   :  { %v265_v3 = vmul.f32 %v259_v63, %v259_v63  ;;  %v267_v7 = vsub.f32 %v253_v45, %v259_v63 }
 0x32b   :  { %v263_v2 = vpop.xlane.xlu1 %262 }
 0x32c   :  { %v264_v4 = vmul.f32 0.015625, %v263_v2  ;;  %v622_v2 = vld [vmem:[#allocation7 + $0xd] ss:$0 sm:$0xff] }
 0x32e   :  { %v266_v5 = vsub.f32 %v264_v4, %v265_v3  ;;  %v623_v4 = vld [vmem:[#allocation7 + $0xe] ss:$0 sm:$0xff] }
 0x330   :  { %v268_v6 = vadd.f32 1e-05, %v266_v5 }
 0x332   :  { %783 = vrsqrt.f32 %v268_v6 }
 0x33c   :  { %v784_v8 = vpop.eup %783 }
 0x33d   :  { %v270_v10 = vmul.f32 %v784_v8, %v267_v7 }
 0x33f   :  { %v275_v12 = vmul.f32 %v614_v9, %v270_v10 }
 0x341   :  { %v280_v13 = vadd.f32 %v615_v11, %v275_v12 }
 0x343   :  { %v281_v14 = vmax.f32 %v280_v13, 0.0 }
 0x345   :  { %706 = vmatmul.mubr.msk.f32.vlgmr.msra.gmra.mrb[2].mxu0 %vm140_vm2, %v281_v14 }
 0x346   :  { %727 = vmatprep.mubr.msk.f32.mxu0 %vm891_vm0, %v892_v1  ;;  %768 = vmatpush3.bf16.msra.mxu0 %v767_v51 }
 0x347   :  { %769 = vmatprep.subr.bf16.mxu0 %v890_v0  ;;  %v624_v0 = vld [vmem:[#allocation7 + $0x10] ss:$0 sm:$0xff] }
 0x34a   :  { %771 = vmatpush3.bf16.msra.mxu0 %v770_v54 }
 0x418   :  { %v366_v16 = vpop.f32.mrb[2].mxu0 }
 0x419   :  { %v367_v17 = vadd.f32 %v616_v15, %v366_v16  ;;  %v707_v18 = vpop.f32.mrb[3].mxu0 }
 0x41b   :  { %v370_v19 = vsel %vm66_vm1, %v367_v17, 0.0  ;;  %v375_v20 = vmul.f32 %v367_v17, %v367_v17 }
 0x41c   :  { %371 = vadd.xlane.f32.xlu0 %v370_v19 }
 0x41d   :  { %v376_v21 = vsel %vm66_vm1, %v375_v20, 0.0 }
 0x41e   :  { %377 = vadd.xlane.f32.xlu1 %v376_v21 }
 0x4a9   :  { %v372_v1 = vpop.xlane.xlu0 %371 }
 0x4aa   :  { %v374_v28 = vmul.f32 0.03125, %v372_v1 }
 0x4ab   :  { %v378_v29 = vpop.xlane.xlu1 %377 }
 0x4ac   :  { %v380_v30 = vmul.f32 %v374_v28, %v374_v28  ;;  %v379_v31 = vmul.f32 0.03125, %v378_v29  ;;  %v382_v34 = vsub.f32 %v367_v17, %v374_v28 }
 0x4ae   :  { %v381_v32 = vsub.f32 %v379_v31, %v380_v30 }
 0x4b0   :  { %v383_v33 = vadd.f32 1e-05, %v381_v32 }
 0x4b2   :  { %785 = vrsqrt.f32 %v383_v33 }
 0x4bc   :  { %v786_v35 = vpop.eup %785 }
 0x4bd   :  { %v385_v37 = vmul.f32 %v786_v35, %v382_v34 }
 0x4bf   :  { %v390_v39 = vmul.f32 %v618_v36, %v385_v37 }
 0x4c1   :  { %v395_v40 = vadd.f32 %v619_v38, %v390_v39 }
 0x4c3   :  { %v396_v41 = vmax.f32 %v395_v40, 0.0 }
 0x4c5   :  { %717 = vmatmul.mubr.msk.f32.vlgmr.msra.gmra.mrb[2].mxu1 %vm66_vm1, %v396_v41 }
 0x598   :  { %v477_v43 = vpop.f32.mrb[2].mxu1 }
 0x599   :  { %v478_v44 = vadd.f32 %v620_v42, %v477_v43  ;;  %v718_v45 = vpop.f32.mrb[3].mxu1 }
 0x59b   :  { %v481_v46 = vsel %vm66_vm1, %v478_v44, 0.0  ;;  %v485_v47 = vmul.f32 %v478_v44, %v478_v44 }
 0x59c   :  { %482 = vadd.xlane.f32.xlu0 %v481_v46 }
 0x59d   :  { %v486_v48 = vsel %vm66_vm1, %v485_v47, 0.0 }
 0x59e   :  { %487 = vadd.xlane.f32.xlu1 %v486_v48 }
 0x629   :  { %v483_v55 = vpop.xlane.xlu0 %482 }
 0x62a   :  { %v484_v56 = vmul.f32 0.03125, %v483_v55 }
 0x62b   :  { %v488_v57 = vpop.xlane.xlu1 %487 }
 0x62c   :  { %v490_v58 = vmul.f32 %v484_v56, %v484_v56  ;;  %v489_v59 = vmul.f32 0.03125, %v488_v57  ;;  %v492_v62 = vsub.f32 %v478_v44, %v484_v56 }
 0x62e   :  { %v491_v60 = vsub.f32 %v489_v59, %v490_v58 }
 0x630   :  { %v493_v61 = vadd.f32 1e-05, %v491_v60 }
 0x632   :  { %787 = vrsqrt.f32 %v493_v61 }
 0x63c   :  { %v788_v63 = vpop.eup %787 }
 0x63d   :  { %v495_v3 = vmul.f32 %v788_v63, %v492_v62 }
 0x63f   :  { %v500_v5 = vmul.f32 %v622_v2, %v495_v3 }
 0x641   :  { %v505_v6 = vadd.f32 %v623_v4, %v500_v5 }
 0x643   :  { %v506_v7 = vmax.f32 %v505_v6, 0.0 }
 0x645   :  { %728 = vmatmul.mubr.msk.f32.vlgmr.msra.gmra.mrb[4].mxu0 %vm66_vm1, %v506_v7 }
 0x718   :  { %v585_v8 = vpop.f32.mrb[4].mxu0 }
 0x719   :  { %v586_v9 = vadd.f32 %v624_v0, %v585_v8  ;;  %v729_v10 = vpop.f32.mrb[5].mxu0 }
 0x71b   :  { %789 = vtanh.f32 %v586_v9 }
 0x725   :  { %v790_v11 = vpop.eup %789 }
 0x726   :  { %591 = vst.msk [vmem:[#allocation8] sm:$0xff] %vm590_vm3, %v790_v11 }
 0x727   :  { %868 = shalt.err (!%p865_p0)
}
 0x728   :  { %s869_s25 = scalar_lea.hbm %s1008_s3, 128 }
 0x729   :  { %p870_p1 = scmp.ne.s32.totalorder %s1008_s3, %s869_s25  ;;  %p873_p2 = scmp.lt.u32.totalorder %s869_s25, %s1008_s3 }
 0x72b   :  { %p875_p3 = pnand %p873_p2, %p870_p1 }
 0x72d   :  { %878 = shalt.err (!%p875_p3)
}
 0x72e   :  { %601 = dma.vmem_to_hbm [thread:$0]  %s599_s21, 128, %s1008_s3, [#allocation4]  }
 0x72f   :  { %883 = dma.done.wait [#allocation4], 128  }
 0x730   :  { %884 = vsyncadd [#allocation4], 4294967168 }
 0x731   :  { %605 = vsyncpa [#allocation3], 1 }
 0x732   :  { %606 = vsyncpa [#allocation6], 1 }
 0x733   :  { %607 = vsyncpa [#allocation4], 1 }

</bundles_post_ra>
